<compile_context>
chip_gen: v7x
topology: tpu7x:2x2x1
jax: 0.10.0
libtpu: 0.0.40
codegen_flags: <defaults>
</compile_context>

<pallas_src>
import functools

import jax
import jax.numpy as jnp
from jax.experimental import pallas as pl
from jax.experimental.pallas import tpu as pltpu

DIMS = [(187, 100), (100, 50), (50, 25), (25, 2)]   # (fan_in, fan_out) per layer
IN_PAD = 192          # 187 padded up (multiple of 8; last dim of a full block)
HID_PAD = 128         # every hidden/out width padded to one full lane group
NEG_SLOPE = 0.01


def _round_up(x, m):
    return (x + m - 1) // m * m


def _leaky_relu(x, slope=NEG_SLOPE):
    return jnp.where(x > 0, x, slope * x)


def mlp_kernel(x_ref, w1_ref, wr_ref, b_ref, o_ref):
    """One batch tile: 4 fused (matmul + bias + leaky_relu) layers.

    x_ref : [TB, 192]       bf16   (zero-padded features)
    w1_ref: [192, 128]      bf16   (fc1, zero-padded)
    wr_ref: [3, 128, 128]   bf16   (fc2..fc4, zero-padded)
    b_ref : [4, 1, 128]     f32    (biases, zero-padded)
    o_ref : [TB, 2]         f32
    """
    # Layer 1 (MXU in bf16, f32 accumulate; element-wise in f32).
    h = jnp.dot(x_ref[...], w1_ref[...], preferred_element_type=jnp.float32)
    h = _leaky_relu(h + b_ref[0])

    # Layers 2..4 (statically unrolled).
    for i in range(3):
        h = jnp.dot(h.astype(jnp.bfloat16), wr_ref[i],
                    preferred_element_type=jnp.float32)
        h = _leaky_relu(h + b_ref[i + 1])

    # Only the first 2 output columns are real; the rest is zero padding.
    o_ref[...] = h[:, :2].astype(o_ref.dtype)


def pack_params(params):
    """Pack the 4 (W, b) pairs into 3 padded, lane-friendly slabs."""
    w1 = jnp.zeros((IN_PAD, HID_PAD), jnp.bfloat16)
    w1 = w1.at[:DIMS[0][0], :DIMS[0][1]].set(params["w1"].astype(jnp.bfloat16))

    wr = jnp.zeros((3, HID_PAD, HID_PAD), jnp.bfloat16)
    for i in range(1, 4):
        fi, fo = DIMS[i]
        wr = wr.at[i - 1, :fi, :fo].set(params[f"w{i + 1}"].astype(jnp.bfloat16))

    b = jnp.zeros((4, 1, HID_PAD), jnp.float32)
    for i in range(4):
        fo = DIMS[i][1]
        b = b.at[i, 0, :fo].set(params[f"b{i + 1}"].reshape(-1))

    return w1, wr, b


@functools.partial(jax.jit, static_argnames=())
def net_forward(x, w1_slab, wr_slab, b_slab):
    """x: [B, 187] f32. Packed bf16/f32 parameter slabs from pack_params()."""
    B = x.shape[0]
    out_dim = DIMS[-1][1]

    # Batch tile: big (up to 512 rows) to fill the MXU and amortize per-step
    # overhead; rounded to the 8-sublane granule for small batches.
    TB = min(512, _round_up(B, 8))
    B_pad = _round_up(B, TB)
    n_tiles = B_pad // TB

    # Pad + cast activations in the wrapper (halves x DMA traffic).
    x_p = jnp.zeros((B_pad, IN_PAD), jnp.bfloat16)
    x_p = x_p.at[:B, :DIMS[0][0]].set(x.astype(jnp.bfloat16))

    flops = 2 * B_pad * sum(fi * fo for fi, fo in DIMS)
    bytes_accessed = (B_pad * IN_PAD * 2 + B_pad * out_dim * 4 +
                      IN_PAD * HID_PAD * 2 + 3 * HID_PAD * HID_PAD * 2 +
                      4 * HID_PAD * 4)

    out_p = pl.pallas_call(
        mlp_kernel,
        out_shape=jax.ShapeDtypeStruct((B_pad, out_dim), jnp.float32),
        grid=(n_tiles,),
        in_specs=[
            pl.BlockSpec((TB, IN_PAD), lambda i: (i, 0)),          # x tile
            pl.BlockSpec((IN_PAD, HID_PAD), lambda i: (0, 0)),     # w1 (resident)
            pl.BlockSpec((3, HID_PAD, HID_PAD), lambda i: (0, 0, 0)),  # w2..w4
            pl.BlockSpec((4, 1, HID_PAD), lambda i: (0, 0, 0)),    # biases
        ],
        out_specs=pl.BlockSpec((TB, out_dim), lambda i: (i, 0)),
        compiler_params=pltpu.CompilerParams(
            dimension_semantics=("parallel",)),
        cost_estimate=pl.CostEstimate(
            flops=int(flops), transcendentals=0,
            bytes_accessed=int(bytes_accessed)),
    )(x_p, w1_slab, wr_slab, b_slab)

    return out_p[:B]


def init_params(key):
    """Deterministic init. Weights: Kaiming-normal (fan_in, like
    torch.nn.init.kaiming_normal_); biases: PyTorch Linear default
    U(-1/sqrt(fan_in), 1/sqrt(fan_in)). Stored as [in, out] (transposed vs
    PyTorch's [out, in])."""
    params = {}
    for i, (fan_in, fan_out) in enumerate(DIMS, start=1):
        key, kw, kb = jax.random.split(key, 3)
        std = jnp.sqrt(2.0 / fan_in)
        params[f"w{i}"] = (std * jax.random.normal(kw, (fan_in, fan_out))
                           ).astype(jnp.float32)
        bound = 1.0 / jnp.sqrt(fan_in)
        params[f"b{i}"] = jax.random.uniform(
            kb, (1, fan_out), minval=-bound, maxval=bound).astype(jnp.float32)
    return params


def reference_forward(x, params):
    """Pure-JAX reference mirroring the kernel math (bf16 MXU operands,
    f32 accumulation, f32 element-wise)."""
    h = x
    for i in range(1, 5):
        w = params[f"w{i}"].astype(jnp.bfloat16)
        h = jnp.dot(h.astype(jnp.bfloat16), w,
                    preferred_element_type=jnp.float32)
        h = _leaky_relu(h + params[f"b{i}"])
    return h


if __name__ == "__main__":
    key = jax.random.PRNGKey(0)
    key, kx = jax.random.split(key)

    B = 64  # small batch for the smoke test; kernel tiles any batch size
    x = jax.random.normal(kx, (B, 187), dtype=jnp.float32)
    params = init_params(key)
    w1_slab, wr_slab, b_slab = pack_params(params)

    out = net_forward(x, w1_slab, wr_slab, b_slab)
    out = jax.block_until_ready(out)

    ref = reference_forward(x, params)
    assert out.shape == (B, 2), out.shape
    assert jnp.allclose(out, ref, atol=1e-3, rtol=1e-3), "mismatch vs JAX reference"

    print("KERNEL_OK")
</pallas_src>

<mosaic_0001>
module attributes {stable_mosaic.version = 11 : i64} {
  func.func @mlp_kernel(%arg0: i32, %arg1: memref<64x192xbf16, #tpu.memory_space<vmem>>, %arg2: memref<192x128xbf16, #tpu.memory_space<vmem>>, %arg3: memref<3x128x128xbf16, #tpu.memory_space<vmem>>, %arg4: memref<4x1x128xf32, #tpu.memory_space<vmem>>, %arg5: memref<64x2xf32, #tpu.memory_space<vmem>>) attributes {dimension_semantics = [#tpu.dimension_semantics<parallel>], iteration_bounds = array<i64: 1>, scalar_prefetch = 0 : i64, scratch_operands = 0 : i64, tpu.core_type = #tpu.core_type<tc>, window_params = [{transform_indices = @transform_0, window_bounds = array<i64: 64, 192>}, {pipeline_mode = #tpu.pipeline_mode<synchronous>, transform_indices = @transform_1, window_bounds = array<i64: 192, 128>}, {pipeline_mode = #tpu.pipeline_mode<synchronous>, transform_indices = @transform_2, window_bounds = array<i64: 3, 128, 128>}, {pipeline_mode = #tpu.pipeline_mode<synchronous>, transform_indices = @transform_3, window_bounds = array<i64: 4, 1, 128>}, {transform_indices = @transform_4, window_bounds = array<i64: 64, 2>}]} {
    %c0 = arith.constant 0 : index
    %c0_0 = arith.constant 0 : index
    %0 = vector.load %arg1[%c0, %c0_0] : memref<64x192xbf16, #tpu.memory_space<vmem>>, vector<64x192xbf16>
    %c0_1 = arith.constant 0 : index
    %c0_2 = arith.constant 0 : index
    %1 = vector.load %arg2[%c0_1, %c0_2] : memref<192x128xbf16, #tpu.memory_space<vmem>>, vector<192x128xbf16>
    %cst = arith.constant dense<0.000000e+00> : vector<64x128xf32>
    %2 = tpu.matmul %0, %1, %cst {dimension_numbers = #tpu.dot_dimension_numbers<[1], [0], [0], [1], [0, 0, 1, 1], [], []>} : vector<64x192xbf16>, vector<192x128xbf16>, vector<64x128xf32> -> vector<64x128xf32>
    %c0_3 = arith.constant 0 : index
    %c0_4 = arith.constant 0 : index
    %c0_5 = arith.constant 0 : index
    %3 = vector.load %arg4[%c0_3, %c0_4, %c0_5] : memref<4x1x128xf32, #tpu.memory_space<vmem>>, vector<1x1x128xf32>
    %4 = vector.shape_cast %3 : vector<1x1x128xf32> to vector<1x128xf32>
    %5 = vector.broadcast %4 : vector<1x128xf32> to vector<64x128xf32>
    %6 = arith.addf %2, %5 : vector<64x128xf32>
    %cst_6 = arith.constant 0.000000e+00 : f32
    %7 = vector.broadcast %cst_6 : f32 to vector<64x128xf32>
    %8 = arith.cmpf ogt, %6, %7 : vector<64x128xf32>
    %cst_7 = arith.constant 0.00999999977 : f32
    %9 = vector.broadcast %cst_7 : f32 to vector<64x128xf32>
    %10 = arith.mulf %9, %6 : vector<64x128xf32>
    %11 = arith.select %8, %6, %10 : vector<64x128xi1>, vector<64x128xf32>
    %12 = arith.truncf %11 : vector<64x128xf32> to vector<64x128xbf16>
    %c0_8 = arith.constant 0 : index
    %c0_9 = arith.constant 0 : index
    %c0_10 = arith.constant 0 : index
    %13 = vector.load %arg3[%c0_8, %c0_9, %c0_10] : memref<3x128x128xbf16, #tpu.memory_space<vmem>>, vector<1x128x128xbf16>
    %14 = vector.shape_cast %13 : vector<1x128x128xbf16> to vector<128x128xbf16>
    %cst_11 = arith.constant dense<0.000000e+00> : vector<64x128xf32>
    %15 = tpu.matmul %12, %14, %cst_11 {dimension_numbers = #tpu.dot_dimension_numbers<[1], [0], [0], [1], [0, 0, 1, 1], [], []>} : vector<64x128xbf16>, vector<128x128xbf16>, vector<64x128xf32> -> vector<64x128xf32>
    %c1 = arith.constant 1 : index
    %c0_12 = arith.constant 0 : index
    %c0_13 = arith.constant 0 : index
    %16 = vector.load %arg4[%c1, %c0_12, %c0_13] : memref<4x1x128xf32, #tpu.memory_space<vmem>>, vector<1x1x128xf32>
    %17 = vector.shape_cast %16 : vector<1x1x128xf32> to vector<1x128xf32>
    %18 = vector.broadcast %17 : vector<1x128xf32> to vector<64x128xf32>
    %19 = arith.addf %15, %18 : vector<64x128xf32>
    %cst_14 = arith.constant 0.000000e+00 : f32
    %20 = vector.broadcast %cst_14 : f32 to vector<64x128xf32>
    %21 = arith.cmpf ogt, %19, %20 : vector<64x128xf32>
    %cst_15 = arith.constant 0.00999999977 : f32
    %22 = vector.broadcast %cst_15 : f32 to vector<64x128xf32>
    %23 = arith.mulf %22, %19 : vector<64x128xf32>
    %24 = arith.select %21, %19, %23 : vector<64x128xi1>, vector<64x128xf32>
    %25 = arith.truncf %24 : vector<64x128xf32> to vector<64x128xbf16>
    %c1_16 = arith.constant 1 : index
    %c0_17 = arith.constant 0 : index
    %c0_18 = arith.constant 0 : index
    %26 = vector.load %arg3[%c1_16, %c0_17, %c0_18] : memref<3x128x128xbf16, #tpu.memory_space<vmem>>, vector<1x128x128xbf16>
    %27 = vector.shape_cast %26 : vector<1x128x128xbf16> to vector<128x128xbf16>
    %cst_19 = arith.constant dense<0.000000e+00> : vector<64x128xf32>
    %28 = tpu.matmul %25, %27, %cst_19 {dimension_numbers = #tpu.dot_dimension_numbers<[1], [0], [0], [1], [0, 0, 1, 1], [], []>} : vector<64x128xbf16>, vector<128x128xbf16>, vector<64x128xf32> -> vector<64x128xf32>
    %c2 = arith.constant 2 : index
    %c0_20 = arith.constant 0 : index
    %c0_21 = arith.constant 0 : index
    %29 = vector.load %arg4[%c2, %c0_20, %c0_21] : memref<4x1x128xf32, #tpu.memory_space<vmem>>, vector<1x1x128xf32>
    %30 = vector.shape_cast %29 : vector<1x1x128xf32> to vector<1x128xf32>
    %31 = vector.broadcast %30 : vector<1x128xf32> to vector<64x128xf32>
    %32 = arith.addf %28, %31 : vector<64x128xf32>
    %cst_22 = arith.constant 0.000000e+00 : f32
    %33 = vector.broadcast %cst_22 : f32 to vector<64x128xf32>
    %34 = arith.cmpf ogt, %32, %33 : vector<64x128xf32>
    %cst_23 = arith.constant 0.00999999977 : f32
    %35 = vector.broadcast %cst_23 : f32 to vector<64x128xf32>
    %36 = arith.mulf %35, %32 : vector<64x128xf32>
    %37 = arith.select %34, %32, %36 : vector<64x128xi1>, vector<64x128xf32>
    %38 = arith.truncf %37 : vector<64x128xf32> to vector<64x128xbf16>
    %c2_24 = arith.constant 2 : index
    %c0_25 = arith.constant 0 : index
    %c0_26 = arith.constant 0 : index
    %39 = vector.load %arg3[%c2_24, %c0_25, %c0_26] : memref<3x128x128xbf16, #tpu.memory_space<vmem>>, vector<1x128x128xbf16>
    %40 = vector.shape_cast %39 : vector<1x128x128xbf16> to vector<128x128xbf16>
    %cst_27 = arith.constant dense<0.000000e+00> : vector<64x128xf32>
    %41 = tpu.matmul %38, %40, %cst_27 {dimension_numbers = #tpu.dot_dimension_numbers<[1], [0], [0], [1], [0, 0, 1, 1], [], []>} : vector<64x128xbf16>, vector<128x128xbf16>, vector<64x128xf32> -> vector<64x128xf32>
    %c3 = arith.constant 3 : index
    %c0_28 = arith.constant 0 : index
    %c0_29 = arith.constant 0 : index
    %42 = vector.load %arg4[%c3, %c0_28, %c0_29] : memref<4x1x128xf32, #tpu.memory_space<vmem>>, vector<1x1x128xf32>
    %43 = vector.shape_cast %42 : vector<1x1x128xf32> to vector<1x128xf32>
    %44 = vector.broadcast %43 : vector<1x128xf32> to vector<64x128xf32>
    %45 = arith.addf %41, %44 : vector<64x128xf32>
    %cst_30 = arith.constant 0.000000e+00 : f32
    %46 = vector.broadcast %cst_30 : f32 to vector<64x128xf32>
    %47 = arith.cmpf ogt, %45, %46 : vector<64x128xf32>
    %cst_31 = arith.constant 0.00999999977 : f32
    %48 = vector.broadcast %cst_31 : f32 to vector<64x128xf32>
    %49 = arith.mulf %48, %45 : vector<64x128xf32>
    %50 = arith.select %47, %45, %49 : vector<64x128xi1>, vector<64x128xf32>
    %51 = vector.extract_strided_slice %50 {offsets = [0, 0], sizes = [64, 2], strides = [1, 1]} : vector<64x128xf32> to vector<64x2xf32>
    %c0_32 = arith.constant 0 : index
    %c0_33 = arith.constant 0 : index
    %52 = vector.load %arg5[%c0_32, %c0_33] : memref<64x2xf32, #tpu.memory_space<vmem>>, vector<64x2xf32>
    tpu.vector_store %arg5[%c0_32, %c0_33], %51 {strides = array<i32>} : memref<64x2xf32, #tpu.memory_space<vmem>>, vector<64x2xf32>,
    return
  }
  func.func @transform_0(%arg0: i32) -> (i32, i32) {
    %c0_i32 = arith.constant 0 : i32
    %c0_i32_0 = arith.constant 0 : i32
    return %arg0, %c0_i32 : i32, i32
  }
  func.func @transform_1(%arg0: i32) -> (i32, i32) {
    %c0_i32 = arith.constant 0 : i32
    %c0_i32_0 = arith.constant 0 : i32
    %c0_i32_1 = arith.constant 0 : i32
    return %c0_i32, %c0_i32_0 : i32, i32
  }
  func.func @transform_2(%arg0: i32) -> (i32, i32, i32) {
    %c0_i32 = arith.constant 0 : i32
    %c0_i32_0 = arith.constant 0 : i32
    %c0_i32_1 = arith.constant 0 : i32
    %c0_i32_2 = arith.constant 0 : i32
    return %c0_i32, %c0_i32_0, %c0_i32_1 : i32, i32, i32
  }
  func.func @transform_3(%arg0: i32) -> (i32, i32, i32) {
    %c0_i32 = arith.constant 0 : i32
    %c0_i32_0 = arith.constant 0 : i32
    %c0_i32_1 = arith.constant 0 : i32
    %c0_i32_2 = arith.constant 0 : i32
    return %c0_i32, %c0_i32_0, %c0_i32_1 : i32, i32, i32
  }
  func.func @transform_4(%arg0: i32) -> (i32, i32) {
    %c0_i32 = arith.constant 0 : i32
    %c0_i32_0 = arith.constant 0 : i32
    return %arg0, %c0_i32 : i32, i32
  }
}

</mosaic_0001>

<bundles_post_ra>
// kernel: net_forward.1
= control target key start
LH: loop header
LB: loop body
LE: loop exit
PB: predicated region body
PF: predicated region fallthrough
CT: control target
= control target key end

     0   :  { %v1021_v0 = vmov 0   ;;  %vm165_vm0 = vcmask 523264   ;;  %s1227_s1 = inlined_call_operand.vmem [shape: bf16[192,128], index: 1, kind: input, shape index: {}]   ;;  %s1228_s0 = inlined_call_operand.vmem [shape: bf16[64,192], index: 0, kind: input, shape index: {}]   ;;  %s1229_s2 = inlined_call_operand.vmem [shape: bf16[3,128,128], index: 2, kind: input, shape index: {}]   ;;  %s1230_s3 = inlined_call_operand.vmem [shape: f32[4,1,128], index: 3, kind: input, shape index: {}]   ;;  %s1231_s4 = inlined_call_operand.vmem [shape: f32[64,2], index: 4, kind: output, shape index: {}]  }
   0x1   :  { %178 = vmatprep.subr.bf16.mxu0 %v1021_v0  ;;  %v973_v1 = vld [vmem:[%s1227_s1] sm:$0xff]   ;;  %v974_v2 = vld [vmem:[%s1227_s1 + $0x8] sm:$0xff]   ;;  %v975_v3 = vld [vmem:[%s1227_s1 + $0x10] sm:$0xff]  }
   0x2   :  { %179 = vmatpush1.bf16.msra.mxu0 %v973_v1  ;;  %v976_v4 = vld [vmem:[%s1227_s1 + $0x18] sm:$0xff]   ;;  %v987_v5 = vld [vmem:[%s1228_s0 + $0x4] ss:$8 sps:$4 sm:$0xff]   ;;  %v979_v10 = vld [vmem:[%s1227_s1 + $0x30] sm:$0xff]  }
   0x3   :  { %180 = vmatprep.subr.bf16.mxu0 %v1021_v0  ;;  %v977_v6 = vld [vmem:[%s1227_s1 + $0x20] sm:$0xff]   ;;  %798 = vmatprep.mubr.msk.bf16.mxu0 %vm165_vm0, %v987_v5  ;;  %v978_v7 = vld [vmem:[%s1227_s1 + $0x28] sm:$0xff]   ;;  %v999_v11 = vld [vmem:[%s1229_s2 + $0x10] sm:$0xff]  }
   0x4   :  { %v997_v8 = vld [vmem:[%s1229_s2] sm:$0xff]   ;;  %v998_v9 = vld [vmem:[%s1229_s2 + $0x8] sm:$0xff]   ;;  %v980_v12 = vld [vmem:[%s1227_s1 + $0x38] sm:$0xff]  }
   0x5   :  { %900 = vmatprep.subr.bf16.mxu1 %v997_v8  ;;  %v1000_v13 = vld [vmem:[%s1229_s2 + $0x18] sm:$0xff]   ;;  %v981_v14 = vld [vmem:[%s1227_s1 + $0x40] sm:$0xff]   ;;  %v982_v15 = vld [vmem:[%s1227_s1 + $0x48] sm:$0xff]  }
   0x6   :  { %181 = vmatpush1.bf16.msra.mxu0 %v974_v2  ;;  %901 = vmatpush3.bf16.msra.mxu1 %v997_v8  ;;  %v983_v16 = vld [vmem:[%s1227_s1 + $0x50] sm:$0xff]   ;;  %v984_v17 = vld [vmem:[%s1227_s1 + $0x58] sm:$0xff]   ;;  %v985_v18 = vld [vmem:[%s1228_s0] ss:$8 sps:$4 sm:$0xff]  }
   0x7   :  { %182 = vmatprep.subr.bf16.mxu0 %v1021_v0  ;;  %902 = vmatprep.subr.bf16.mxu1 %v998_v9  ;;  %v988_v19 = vld [vmem:[%s1228_s0 + $0x14] ss:$8 sps:$4 sm:$0xff]   ;;  %v990_v20 = vld [vmem:[%s1228_s0 + $0x10] ss:$8 sps:$4 sm:$0xff]   ;;  %v991_v21 = vld [vmem:[%s1228_s0 + $0x24] ss:$8 sps:$4 sm:$0xff]  }
   0x8   :  { %v993_v22 = vld [vmem:[%s1228_s0 + $0x20] ss:$8 sps:$4 sm:$0xff]   ;;  %v994_v23 = vld [vmem:[%s1228_s0 + $0x34] ss:$8 sps:$4 sm:$0xff]   ;;  %v996_v24 = vld [vmem:[%s1228_s0 + $0x30] ss:$8 sps:$4 sm:$0xff]  }
   0x9   :  { %v1001_v25 = vld [vmem:[%s1229_s2 + $0x20] sm:$0xff]   ;;  %v1002_v26 = vld [vmem:[%s1229_s2 + $0x28] sm:$0xff]   ;;  %v1003_v27 = vld [vmem:[%s1229_s2 + $0x30] sm:$0xff]  }
   0xa   :  { %183 = vmatpush1.bf16.msra.mxu0 %v975_v3  ;;  %903 = vmatpush3.bf16.msra.mxu1 %v998_v9  ;;  %v1004_v28 = vld [vmem:[%s1229_s2 + $0x38] sm:$0xff]   ;;  %v1005_v29 = vld [vmem:[%s1229_s2 + $0x40] sm:$0xff]   ;;  %v1006_v54 = vld [vmem:[%s1229_s2 + $0x48] sm:$0xff]  }
   0xb   :  { %184 = vmatprep.subr.bf16.mxu0 %v1021_v0  ;;  %904 = vmatprep.subr.bf16.mxu1 %v999_v11  ;;  %v777_v30 = vld [vmem:[%s1230_s3] ss:$0 sm:$0xff]  ;;  %v1007_v61 = vld [vmem:[%s1229_s2 + $0x50] sm:$0xff]   ;;  %v1008_v3 = vld [vmem:[%s1229_s2 + $0x58] sm:$0xff]  }
   0xe   :  { %185 = vmatpush1.bf16.msra.mxu0 %v976_v4  ;;  %905 = vmatpush3.bf16.msra.mxu1 %v999_v11 }
   0xf   :  { %186 = vmatprep.subr.bf16.mxu0 %v1021_v0  ;;  %906 = vmatprep.subr.bf16.mxu1 %v1000_v13 }
  0x12   :  { %187 = vmatpush1.bf16.msra.mxu0 %v977_v6  ;;  %907 = vmatpush3.bf16.msra.mxu1 %v1000_v13 }
  0x13   :  { %188 = vmatprep.subr.bf16.mxu0 %v1021_v0  ;;  %908 = vmatprep.subr.bf16.mxu1 %v1001_v25 }
  0x16   :  { %189 = vmatpush1.bf16.msra.mxu0 %v978_v7  ;;  %909 = vmatpush3.bf16.msra.mxu1 %v1001_v25 }
  0x17   :  { %190 = vmatprep.subr.bf16.mxu0 %v1021_v0  ;;  %910 = vmatprep.subr.bf16.mxu1 %v1002_v26 }
  0x1a   :  { %191 = vmatpush1.bf16.msra.mxu0 %v979_v10  ;;  %911 = vmatpush3.bf16.msra.mxu1 %v1002_v26  ;;  %v1009_v10 = vld [vmem:[%s1229_s2 + $0x60] sm:$0xff]  }
  0x1b   :  { %192 = vmatprep.subr.bf16.mxu0 %v1021_v0  ;;  %912 = vmatprep.subr.bf16.mxu1 %v1003_v27 }
  0x1e   :  { %193 = vmatpush1.bf16.msra.mxu0 %v980_v12  ;;  %913 = vmatpush3.bf16.msra.mxu1 %v1003_v27 }
  0x1f   :  { %194 = vmatprep.subr.bf16.mxu0 %v1021_v0  ;;  %914 = vmatprep.subr.bf16.mxu1 %v1004_v28 }
  0x22   :  { %195 = vmatpush1.bf16.msra.mxu0 %v981_v14  ;;  %915 = vmatpush3.bf16.msra.mxu1 %v1004_v28 }
  0x23   :  { %196 = vmatprep.subr.bf16.mxu0 %v1021_v0  ;;  %924 = vmatprep.subr.bf16.mxu1 %v1005_v29 }
  0x26   :  { %197 = vmatpush1.bf16.msra.mxu0 %v982_v15  ;;  %v1010_v15 = vld [vmem:[%s1229_s2 + $0x68] sm:$0xff]  }
  0x27   :  { %198 = vmatprep.subr.bf16.mxu0 %v1021_v0 }
  0x2a   :  { %199 = vmatpush1.bf16.msra.mxu0 %v983_v16  ;;  %v1011_v16 = vld [vmem:[%s1229_s2 + $0x70] sm:$0xff]  }
  0x2b   :  { %200 = vmatprep.subr.bf16.mxu0 %v1021_v0 }
  0x2e   :  { %201 = vmatpush1.bf16.msra.mxu0 %v984_v17  ;;  %v1012_v17 = vld [vmem:[%s1229_s2 + $0x78] sm:$0xff]  }
  0x31   :  { %211 = vmatmul.mubr.bf16.vlgmr.msra.gmra.mrb[0].mxu0 %v985_v18  ;;  %v1013_v18 = vld [vmem:[%s1229_s2 + $0x80] sm:$0xff]  }
  0x32   :  { %799 = vmatprep.mubr.msk.bf16.mxu0 %vm165_vm0, %v988_v19  ;;  %v1014_v19 = vld [vmem:[%s1229_s2 + $0x88] sm:$0xff]   ;;  %948 = vmatprep.subr.bf16.mxu0 %v1013_v18 }
  0x33   :  { %949 = vmatpush3.bf16.msra.mxu0 %v1013_v18 }
  0x34   :  { %950 = vmatprep.subr.bf16.mxu0 %v1014_v19 }
  0x37   :  { %951 = vmatpush3.bf16.msra.mxu0 %v1014_v19 }
  0x39   :  { %219 = vmatmul.mubr.bf16.gmra.mrb[4].mxu0 %v990_v20  ;;  %v1015_v20 = vld [vmem:[%s1229_s2 + $0x90] sm:$0xff]  }
  0x3a   :  { %800 = vmatprep.mubr.msk.bf16.mxu0 %vm165_vm0, %v991_v21  ;;  %952 = vmatprep.subr.bf16.mxu0 %v1015_v20  ;;  %v1016_v21 = vld [vmem:[%s1229_s2 + $0x98] sm:$0xff]  }
  0x3b   :  { %953 = vmatpush3.bf16.msra.mxu0 %v1015_v20 }
  0x3c   :  { %954 = vmatprep.subr.bf16.mxu0 %v1016_v21 }
  0x3f   :  { %955 = vmatpush3.bf16.msra.mxu0 %v1016_v21 }
  0x41   :  { %227 = vmatmul.mubr.bf16.gmra.mrb[8].mxu0 %v993_v22  ;;  %v1017_v22 = vld [vmem:[%s1229_s2 + $0xa0] sm:$0xff]  }
  0x42   :  { %801 = vmatprep.mubr.msk.bf16.mxu0 %vm165_vm0, %v994_v23  ;;  %956 = vmatprep.subr.bf16.mxu0 %v1017_v22  ;;  %v803_v23 = vld [vmem:[%s1230_s3 + $0x1] ss:$0 sm:$0xff] }
  0x43   :  { %957 = vmatpush3.bf16.msra.mxu0 %v1017_v22 }
  0x49   :  { %235 = vmatmul.mubr.bf16.gmra.mrb[12].mxu0 %v996_v24 }
 0x104   :  { %v212_v31 = vpop.f32.mrb[0].mxu0 }
 0x105   :  { %v213_v32 = vadd.f32 %v777_v30, %v212_v31  ;;  %v214_v33 = vpop.f32.mrb[1].mxu0 }
 0x106   :  { %v215_v34 = vpop.f32.mrb[2].mxu0 }
 0x107   :  { %v251_v35 = vmul.f32 0.01, %v213_v32  ;;  %v216_v36 = vadd.f32 %v777_v30, %v215_v34  ;;  %v217_v37 = vpop.f32.mrb[3].mxu0  ;;  %vm243_vm1 = vcmp.gt.f32.partialorder %v213_v32, 0.0 }
 0x109   :  { %v252_v38 = vmul.f32 0.01, %v216_v36  ;;  %vm244_vm2 = vcmp.gt.f32.partialorder %v216_v36, 0.0  ;;  %v259_v39 = vsel %vm243_vm1, %v213_v32, %v251_v35 }
 0x10b   :  { %v260_v40 = vsel %vm244_vm2, %v216_v36, %v252_v38 }
 0x10c   :  { %v220_v41 = vpop.f32.mrb[4].mxu0  ;;  %v267_v42 = vpack.c.bf16 %v260_v40, %v259_v39 }
 0x10d   :  { %v221_v43 = vadd.f32 %v777_v30, %v220_v41  ;;  %v222_v44 = vpop.f32.mrb[5].mxu0 }
 0x10e   :  { %v223_v45 = vpop.f32.mrb[6].mxu0  ;;  %916 = vmatprep.mubr.bf16.mxu1 %v267_v42 }
 0x10f   :  { %v253_v46 = vmul.f32 0.01, %v221_v43  ;;  %v224_v47 = vadd.f32 %v777_v30, %v223_v45  ;;  %v225_v48 = vpop.f32.mrb[7].mxu0  ;;  %vm245_vm3 = vcmp.gt.f32.partialorder %v221_v43, 0.0 }
 0x111   :  { %vm246_vm4 = vcmp.gt.f32.partialorder %v224_v47, 0.0  ;;  %v254_v49 = vmul.f32 0.01, %v224_v47  ;;  %v261_v50 = vsel %vm245_vm3, %v221_v43, %v253_v46 }
 0x113   :  { %v262_v51 = vsel %vm246_vm4, %v224_v47, %v254_v49 }
 0x114   :  { %v228_v52 = vpop.f32.mrb[8].mxu0  ;;  %v268_v53 = vpack.c.bf16 %v262_v51, %v261_v50 }
 0x115   :  { %v229_v55 = vadd.f32 %v777_v30, %v228_v52  ;;  %v230_v56 = vpop.f32.mrb[9].mxu0 }
 0x116   :  { %v231_v57 = vpop.f32.mrb[10].mxu0  ;;  %917 = vmatmul.mubr.bf16.vlgmr.msra.gmra.mrb[0].mxu1 %v268_v53 }
 0x117   :  { %v255_v58 = vmul.f32 0.01, %v229_v55  ;;  %v232_v59 = vadd.f32 %v777_v30, %v231_v57  ;;  %v233_v60 = vpop.f32.mrb[11].mxu0  ;;  %925 = vmatpush3.bf16.msra.mxu1 %v1005_v29  ;;  %vm247_vm5 = vcmp.gt.f32.partialorder %v229_v55, 0.0 }
 0x118   :  { %926 = vmatprep.subr.bf16.mxu1 %v1006_v54  ;;  %v1018_v60 = vld [vmem:[%s1229_s2 + $0xa8] sm:$0xff]  }
 0x119   :  { %vm248_vm6 = vcmp.gt.f32.partialorder %v232_v59, 0.0  ;;  %v256_v62 = vmul.f32 0.01, %v232_v59  ;;  %v263_v63 = vsel %vm247_vm5, %v229_v55, %v255_v58  ;;  %958 = vmatprep.subr.bf16.mxu0 %v1018_v60 }
 0x11a   :  { %959 = vmatpush3.bf16.msra.mxu0 %v1018_v60 }
 0x11b   :  { %v264_v0 = vsel %vm248_vm6, %v232_v59, %v256_v62  ;;  %927 = vmatpush3.bf16.msra.mxu1 %v1006_v54  ;;  %v1020_v62 = vld [vmem:[%s1229_s2 + $0xb8] sm:$0xff]  }
 0x11c   :  { %v236_v1 = vpop.f32.mrb[12].mxu0  ;;  %v269_v2 = vpack.c.bf16 %v264_v0, %v263_v63  ;;  %928 = vmatprep.subr.bf16.mxu1 %v1007_v61  ;;  %v829_v63 = vld [vmem:[%s1230_s3 + $0x2] ss:$0 sm:$0xff] }
 0x11d   :  { %v237_v4 = vadd.f32 %v777_v30, %v236_v1  ;;  %v238_v5 = vpop.f32.mrb[13].mxu0 }
 0x11e   :  { %v239_v6 = vpop.f32.mrb[14].mxu0  ;;  %920 = vmatprep.mubr.bf16.mxu1 %v269_v2 }
 0x11f   :  { %v257_v7 = vmul.f32 0.01, %v237_v4  ;;  %v240_v8 = vadd.f32 %v777_v30, %v239_v6  ;;  %v241_v9 = vpop.f32.mrb[15].mxu0  ;;  %929 = vmatpush3.bf16.msra.mxu1 %v1007_v61  ;;  %vm249_vm7 = vcmp.gt.f32.partialorder %v237_v4, 0.0  ;;  %v1019_v61 = vld [vmem:[%s1229_s2 + $0xb0] sm:$0xff]  }
 0x120   :  { %930 = vmatprep.subr.bf16.mxu1 %v1008_v3  ;;  %960 = vmatprep.subr.bf16.mxu0 %v1019_v61 }
 0x121   :  { %vm250_vm8 = vcmp.gt.f32.partialorder %v240_v8, 0.0  ;;  %v258_v11 = vmul.f32 0.01, %v240_v8  ;;  %v265_v12 = vsel %vm249_vm7, %v237_v4, %v257_v7  ;;  %961 = vmatpush3.bf16.msra.mxu0 %v1019_v61 }
 0x122   :  { %962 = vmatprep.subr.bf16.mxu0 %v1020_v62 }
 0x123   :  { %v266_v13 = vsel %vm250_vm8, %v240_v8, %v258_v11  ;;  %931 = vmatpush3.bf16.msra.mxu1 %v1008_v3 }
 0x124   :  { %v270_v14 = vpack.c.bf16 %v266_v13, %v265_v12  ;;  %932 = vmatprep.subr.bf16.mxu1 %v1009_v10 }
 0x125   :  { %963 = vmatpush3.bf16.msra.mxu0 %v1020_v62 }
 0x126   :  { %921 = vmatmul.mubr.bf16.gmra.mrb[4].mxu1 %v270_v14 }
 0x127   :  { %933 = vmatpush3.bf16.msra.mxu1 %v1009_v10 }
 0x128   :  { %934 = vmatprep.subr.bf16.mxu1 %v1010_v15 }
 0x12b   :  { %935 = vmatpush3.bf16.msra.mxu1 %v1010_v15 }
 0x12c   :  { %936 = vmatprep.subr.bf16.mxu1 %v1011_v16 }
 0x12f   :  { %937 = vmatpush3.bf16.msra.mxu1 %v1011_v16 }
 0x130   :  { %938 = vmatprep.subr.bf16.mxu1 %v1012_v17 }
 0x133   :  { %939 = vmatpush3.bf16.msra.mxu1 %v1012_v17 }
 0x1e9   :  { %v918_v24 = vpop.f32.mrb[0].mxu1 }
 0x1ea   :  { %v386_v25 = vadd.f32 %v918_v24, %v803_v23  ;;  %v377_v26 = vpop.f32.mrb[1].mxu1 }
 0x1eb   :  { %v378_v27 = vadd.f32 %v803_v23, %v377_v26  ;;  %v919_v28 = vpop.f32.mrb[2].mxu1 }
 0x1ec   :  { %v418_v29 = vmul.f32 0.01, %v386_v25  ;;  %v389_v30 = vadd.f32 %v919_v28, %v803_v23  ;;  %v380_v31 = vpop.f32.mrb[3].mxu1  ;;  %vm410_vm9 = vcmp.gt.f32.partialorder %v386_v25, 0.0 }
 0x1ed   :  { %v416_v32 = vmul.f32 0.01, %v378_v27  ;;  %v381_v33 = vadd.f32 %v803_v23, %v380_v31  ;;  %vm408_vm10 = vcmp.gt.f32.partialorder %v378_v27, 0.0 }
 0x1ee   :  { %vm411_vm11 = vcmp.gt.f32.partialorder %v389_v30, 0.0  ;;  %v419_v34 = vmul.f32 0.01, %v389_v30  ;;  %v426_v36 = vsel %vm410_vm9, %v386_v25, %v418_v29 }
 0x1ef   :  { %vm409_vm12 = vcmp.gt.f32.partialorder %v381_v33, 0.0  ;;  %v417_v35 = vmul.f32 0.01, %v381_v33  ;;  %v424_v39 = vsel %vm408_vm10, %v378_v27, %v416_v32  ;;  %vm764_vm10 = vcmask 15360  }
 0x1f0   :  { %v427_v37 = vsel %vm411_vm11, %v389_v30, %v419_v34 }
 0x1f1   :  { %v433_v38 = vpack.c.bf16 %v427_v37, %v426_v36  ;;  %v425_v40 = vsel %vm409_vm12, %v381_v33, %v417_v35  ;;  %v855_v36 = vld [vmem:[%s1230_s3 + $0x3] ss:$0 sm:$0xff] }
 0x1f2   :  { %v432_v41 = vpack.c.bf16 %v425_v40, %v424_v39 }
 0x1f4   :  { %940 = vmatprep.mubr.bf16.mxu1 %v432_v41 }
 0x1f5   :  { %941 = vmatmul.mubr.bf16.vlgmr.msra.gmra.mrb[8].mxu1 %v433_v38 }
 0x1f9   :  { %v922_v42 = vpop.f32.mrb[4].mxu1 }
 0x1fa   :  { %v402_v43 = vadd.f32 %v922_v42, %v803_v23  ;;  %v393_v44 = vpop.f32.mrb[5].mxu1 }
 0x1fb   :  { %v394_v45 = vadd.f32 %v803_v23, %v393_v44  ;;  %v923_v46 = vpop.f32.mrb[6].mxu1 }
 0x1fc   :  { %v422_v47 = vmul.f32 0.01, %v402_v43  ;;  %v405_v48 = vadd.f32 %v923_v46, %v803_v23  ;;  %v396_v49 = vpop.f32.mrb[7].mxu1  ;;  %vm414_vm13 = vcmp.gt.f32.partialorder %v402_v43, 0.0 }
 0x1fd   :  { %v420_v50 = vmul.f32 0.01, %v394_v45  ;;  %v397_v51 = vadd.f32 %v803_v23, %v396_v49  ;;  %vm412_vm14 = vcmp.gt.f32.partialorder %v394_v45, 0.0 }
 0x1fe   :  { %vm415_vm15 = vcmp.gt.f32.partialorder %v405_v48, 0.0  ;;  %v423_v52 = vmul.f32 0.01, %v405_v48  ;;  %v430_v54 = vsel %vm414_vm13, %v402_v43, %v422_v47 }
 0x1ff   :  { %vm413_vm0 = vcmp.gt.f32.partialorder %v397_v51, 0.0  ;;  %v421_v53 = vmul.f32 0.01, %v397_v51  ;;  %v428_v56 = vsel %vm412_vm14, %v394_v45, %v420_v50 }
 0x200   :  { %v431_v55 = vsel %vm415_vm15, %v405_v48, %v423_v52 }
 0x201   :  { %v429_v57 = vsel %vm413_vm0, %v397_v51, %v421_v53  ;;  %v435_v58 = vpack.c.bf16 %v431_v55, %v430_v54 }
 0x202   :  { %v434_v59 = vpack.c.bf16 %v429_v57, %v428_v56 }
 0x204   :  { %944 = vmatprep.mubr.bf16.mxu1 %v434_v59 }
 0x205   :  { %945 = vmatmul.mubr.bf16.gmra.mrb[12].mxu1 %v435_v58 }
 0x2c8   :  { %v942_v0 = vpop.f32.mrb[8].mxu1 }
 0x2c9   :  { %v552_v1 = vadd.f32 %v942_v0, %v829_v63  ;;  %v543_v2 = vpop.f32.mrb[9].mxu1 }
 0x2ca   :  { %v544_v3 = vadd.f32 %v829_v63, %v543_v2  ;;  %v943_v4 = vpop.f32.mrb[10].mxu1 }
 0x2cb   :  { %v584_v5 = vmul.f32 0.01, %v552_v1  ;;  %v555_v6 = vadd.f32 %v943_v4, %v829_v63  ;;  %v546_v7 = vpop.f32.mrb[11].mxu1  ;;  %vm576_vm1 = vcmp.gt.f32.partialorder %v552_v1, 0.0 }
 0x2cc   :  { %v582_v8 = vmul.f32 0.01, %v544_v3  ;;  %v547_v9 = vadd.f32 %v829_v63, %v546_v7  ;;  %vm574_vm2 = vcmp.gt.f32.partialorder %v544_v3, 0.0 }
 0x2cd   :  { %vm577_vm3 = vcmp.gt.f32.partialorder %v555_v6, 0.0  ;;  %v585_v10 = vmul.f32 0.01, %v555_v6  ;;  %v592_v12 = vsel %vm576_vm1, %v552_v1, %v584_v5 }
 0x2ce   :  { %vm575_vm4 = vcmp.gt.f32.partialorder %v547_v9, 0.0  ;;  %v583_v11 = vmul.f32 0.01, %v547_v9  ;;  %v590_v15 = vsel %vm574_vm2, %v544_v3, %v582_v8 }
 0x2cf   :  { %v593_v13 = vsel %vm577_vm3, %v555_v6, %v585_v10 }
 0x2d0   :  { %v599_v14 = vpack.c.bf16 %v593_v13, %v592_v12  ;;  %v591_v16 = vsel %vm575_vm4, %v547_v9, %v583_v11 }
 0x2d1   :  { %v598_v17 = vpack.c.bf16 %v591_v16, %v590_v15 }
 0x2d3   :  { %964 = vmatprep.mubr.bf16.mxu0 %v598_v17 }
 0x2d4   :  { %965 = vmatmul.mubr.bf16.vlgmr.msra.gmra.mrb[16].mxu0 %v599_v14 }
 0x2d8   :  { %v946_v18 = vpop.f32.mrb[12].mxu1 }
 0x2d9   :  { %v568_v19 = vadd.f32 %v946_v18, %v829_v63  ;;  %v559_v20 = vpop.f32.mrb[13].mxu1 }
 0x2da   :  { %v560_v21 = vadd.f32 %v829_v63, %v559_v20  ;;  %v947_v22 = vpop.f32.mrb[14].mxu1 }
 0x2db   :  { %v588_v23 = vmul.f32 0.01, %v568_v19  ;;  %v571_v24 = vadd.f32 %v947_v22, %v829_v63  ;;  %v562_v25 = vpop.f32.mrb[15].mxu1  ;;  %vm580_vm5 = vcmp.gt.f32.partialorder %v568_v19, 0.0 }
 0x2dc   :  { %v586_v26 = vmul.f32 0.01, %v560_v21  ;;  %v563_v27 = vadd.f32 %v829_v63, %v562_v25  ;;  %vm578_vm6 = vcmp.gt.f32.partialorder %v560_v21, 0.0 }
 0x2dd   :  { %vm581_vm7 = vcmp.gt.f32.partialorder %v571_v24, 0.0  ;;  %v589_v28 = vmul.f32 0.01, %v571_v24  ;;  %v596_v30 = vsel %vm580_vm5, %v568_v19, %v588_v23 }
 0x2de   :  { %vm579_vm8 = vcmp.gt.f32.partialorder %v563_v27, 0.0  ;;  %v587_v29 = vmul.f32 0.01, %v563_v27  ;;  %v594_v32 = vsel %vm578_vm6, %v560_v21, %v586_v26 }
 0x2df   :  { %v597_v31 = vsel %vm581_vm7, %v571_v24, %v589_v28 }
 0x2e0   :  { %v595_v33 = vsel %vm579_vm8, %v563_v27, %v587_v29  ;;  %v601_v34 = vpack.c.bf16 %v597_v31, %v596_v30 }
 0x2e1   :  { %v600_v35 = vpack.c.bf16 %v595_v33, %v594_v32 }
 0x2e3   :  { %968 = vmatprep.mubr.bf16.mxu0 %v600_v35 }
 0x2e4   :  { %969 = vmatmul.mubr.bf16.gmra.mrb[20].mxu0 %v601_v34 }
 0x3a7   :  { %v966_v37 = vpop.f32.mrb[16].mxu0 }
 0x3a8   :  { %v718_v38 = vadd.f32 %v966_v37, %v855_v36  ;;  %v709_v39 = vpop.f32.mrb[17].mxu0 }
 0x3a9   :  { %v710_v40 = vadd.f32 %v855_v36, %v709_v39  ;;  %v967_v41 = vpop.f32.mrb[18].mxu0 }
 0x3aa   :  { %vm742_vm9 = vcmp.gt.f32.partialorder %v718_v38, 0.0  ;;  %v750_v42 = vmul.f32 0.01, %v718_v38  ;;  %v721_v43 = vadd.f32 %v967_v41, %v855_v36  ;;  %v712_v44 = vpop.f32.mrb[19].mxu0 }
 0x3ab   :  { %vm740_vm11 = vcmp.gt.f32.partialorder %v710_v40, 0.0  ;;  %v748_v45 = vmul.f32 0.01, %v710_v40  ;;  %v713_v46 = vadd.f32 %v855_v36, %v712_v44 }
 0x3ac   :  { %v758_v47 = vsel %vm742_vm9, %v718_v38, %v750_v42  ;;  %vm743_vm12 = vcmp.gt.f32.partialorder %v721_v43, 0.0  ;;  %v751_v48 = vmul.f32 0.01, %v721_v43 }
 0x3ad   :  { %767 = vst.msk [vmem:[%s1231_s4 + $0x10] sm:$0xff] %vm764_vm10, %v758_v47  ;;  %v756_v49 = vsel %vm740_vm11, %v710_v40, %v748_v45  ;;  %vm741_vm13 = vcmp.gt.f32.partialorder %v713_v46, 0.0  ;;  %v749_v50 = vmul.f32 0.01, %v713_v46 }
 0x3ae   :  { %765 = vst.msk [vmem:[%s1231_s4] sm:$0xff] %vm764_vm10, %v756_v49  ;;  %v759_v51 = vsel %vm743_vm12, %v721_v43, %v751_v48 }
 0x3af   :  { %768 = vst.msk [vmem:[%s1231_s4 + $0x18] sm:$0xff] %vm764_vm10, %v759_v51  ;;  %v757_v52 = vsel %vm741_vm13, %v713_v46, %v749_v50 }
 0x3b0   :  { %766 = vst.msk [vmem:[%s1231_s4 + $0x8] sm:$0xff] %vm764_vm10, %v757_v52 }
 0x3b7   :  { %v970_v53 = vpop.f32.mrb[20].mxu0 }
 0x3b8   :  { %v734_v54 = vadd.f32 %v970_v53, %v855_v36  ;;  %v725_v55 = vpop.f32.mrb[21].mxu0 }
 0x3b9   :  { %v726_v56 = vadd.f32 %v855_v36, %v725_v55  ;;  %v971_v57 = vpop.f32.mrb[22].mxu0 }
 0x3ba   :  { %vm746_vm14 = vcmp.gt.f32.partialorder %v734_v54, 0.0  ;;  %v754_v58 = vmul.f32 0.01, %v734_v54  ;;  %v737_v59 = vadd.f32 %v971_v57, %v855_v36  ;;  %v728_v60 = vpop.f32.mrb[23].mxu0 }
 0x3bb   :  { %vm744_vm15 = vcmp.gt.f32.partialorder %v726_v56, 0.0  ;;  %v752_v61 = vmul.f32 0.01, %v726_v56  ;;  %v729_v62 = vadd.f32 %v855_v36, %v728_v60 }
 0x3bc   :  { %v762_v63 = vsel %vm746_vm14, %v734_v54, %v754_v58  ;;  %vm747_vm0 = vcmp.gt.f32.partialorder %v737_v59, 0.0  ;;  %v755_v0 = vmul.f32 0.01, %v737_v59 }
 0x3bd   :  { %771 = vst.msk [vmem:[%s1231_s4 + $0x30] sm:$0xff] %vm764_vm10, %v762_v63  ;;  %v760_v1 = vsel %vm744_vm15, %v726_v56, %v752_v61  ;;  %vm745_vm1 = vcmp.gt.f32.partialorder %v729_v62, 0.0  ;;  %v753_v2 = vmul.f32 0.01, %v729_v62 }
 0x3be   :  { %769 = vst.msk [vmem:[%s1231_s4 + $0x20] sm:$0xff] %vm764_vm10, %v760_v1  ;;  %v763_v3 = vsel %vm747_vm0, %v737_v59, %v755_v0 }
 0x3bf   :  { %772 = vst.msk [vmem:[%s1231_s4 + $0x38] sm:$0xff] %vm764_vm10, %v763_v3  ;;  %v761_v4 = vsel %vm745_vm1, %v729_v62, %v753_v2 }
 0x3c0   :  { %770 = vst.msk [vmem:[%s1231_s4 + $0x28] sm:$0xff] %vm764_vm10, %v761_v4 }

</bundles_post_ra>
